<compile_context>
chip_gen: v7x
topology: tpu7x:2x2x1
jax: 0.10.0
libtpu: 0.0.40
codegen_flags: <defaults>
</compile_context>

<pallas_src>
import functools

import jax
import jax.numpy as jnp
from jax.experimental import pallas as pl
from jax.experimental.pallas import tpu as pltpu


LANE = 128            # TPU lane width; every activation block is a multiple of this
SLAB = 3 * LANE       # packed output width: [x2h|0] [x2|0] [q|0]


# ----------------------------------------------------------------------------
# Fused forward kernel: fc1+ReLU -> LSTMCell(zero state) -> MLP2+ReLU -> MLP3+ReLU
# All operands are tiny (KB scale) and VMEM-resident for the whole call.
# ----------------------------------------------------------------------------
def _fused_forward_kernel(x_ref, w1_ref, b1_ref, wg_ref, bg_ref,
                          w2_ref, b2_ref, w3_ref, b3_ref, o_ref):
    bf16 = jnp.bfloat16

    # --- fc1 + ReLU ----------------------------------------------- (B, 128)
    # Lanes [64:128] are exactly 0 (zero weight cols, zero bias pad, ReLU).
    x1 = jnp.dot(x_ref[...].astype(bf16), w1_ref[...],
                 preferred_element_type=jnp.float32)
    x1 = jnp.maximum(x1 + b1_ref[...], 0.0)

    # --- LSTMCell, h0 = c0 = 0, single fused gate matmul ----------- (B, 256)
    # Only the i, g, o gates matter (f-gate multiplies c0 == 0); b_hh is folded
    # into the fused gate bias.  Column layout of z:
    #   [ zi (0:64) | zo (64:128) | zg (128:192) | 0 (192:256) ]
    z = jnp.dot(x1.astype(bf16), wg_ref[...],
                preferred_element_type=jnp.float32) + bg_ref[...]

    s = jax.nn.sigmoid(z[:, 0:LANE])          # [ sig(zi) | sig(zo) ]
    t = jnp.tanh(z[:, LANE:2 * LANE])         # [ tanh(zg) | 0 ]
    c_pad = s * t                             # [ c_new    | 0 ]
    s_swap = pltpu.roll(s, 64, 1)             # [ sig(zo) | sig(zi) ]   (XLU, ~free)
    h_pad = jnp.tanh(c_pad) * s_swap          # [ x2h      | 0 ]

    # --- MLP2 + ReLU ------------------------------------------------ (B, 128)
    x2 = jnp.dot(h_pad.astype(bf16), w2_ref[...],
                 preferred_element_type=jnp.float32)
    x2 = jnp.maximum(x2 + b2_ref[...], 0.0)   # [ x2 | 0 ]

    # --- MLP3 + ReLU ------------------------------------------------ (B, 128)
    q = jnp.dot(x2.astype(bf16), w3_ref[...],
                preferred_element_type=jnp.float32)
    q = jnp.maximum(q + b3_ref[...], 0.0)     # [ q | 0 ]

    # Three 128-aligned lane-dense stores (no concat, no masked vst).
    o_ref[:, 0:LANE] = h_pad
    o_ref[:, LANE:2 * LANE] = x2
    o_ref[:, 2 * LANE:3 * LANE] = q


def _const_spec(shape):
    # Full-array block whose block index never changes across the grid, so the
    # (bf16) weights stay VMEM-resident and are DMA'd exactly once.
    return pl.BlockSpec(shape, lambda i: (0,) * len(shape))


# ----------------------------------------------------------------------------
# Pure forward function (jitted in the class) — one pallas_call total.
# ----------------------------------------------------------------------------
def _thgc_forward(inputs, dp, *, H, hidden2, n_actions, block_rows=128):
    B, in_dim = inputs.shape

    # Row blocking: a single full block if B < 128, otherwise 128-row blocks on
    # a 1-D "parallel" grid (sharded across v7x's two TensorCores).
    blk = block_rows if B >= block_rows else B
    nblk = pl.cdiv(B, blk)
    Bp = nblk * blk
    x = inputs if Bp == B else jnp.pad(inputs, ((0, Bp - B), (0, 0)))

    flops = 2 * Bp * (in_dim * LANE + LANE * 2 * LANE + 2 * LANE * LANE)
    transcendentals = 3 * Bp * LANE           # sigmoid block + 2 tanh blocks
    weight_bytes = 2 * (in_dim * LANE + LANE * 2 * LANE + 2 * LANE * LANE)  # bf16
    bytes_accessed = (4 * Bp * in_dim + 4 * Bp * SLAB
                      + weight_bytes + 4 * 5 * LANE)

    out = pl.pallas_call(
        _fused_forward_kernel,
        out_shape=jax.ShapeDtypeStruct((Bp, SLAB), jnp.float32),
        grid=(nblk,),
        in_specs=[
            pl.BlockSpec((blk, in_dim), lambda i: (i, 0)),
            _const_spec(dp["w1"].shape), _const_spec(dp["b1"].shape),
            _const_spec(dp["wg"].shape), _const_spec(dp["bg"].shape),
            _const_spec(dp["w2"].shape), _const_spec(dp["b2"].shape),
            _const_spec(dp["w3"].shape), _const_spec(dp["b3"].shape),
        ],
        out_specs=pl.BlockSpec((blk, SLAB), lambda i: (i, 0)),
        compiler_params=pltpu.CompilerParams(
            dimension_semantics=("parallel",)),
        cost_estimate=pl.CostEstimate(
            flops=flops, transcendentals=transcendentals,
            bytes_accessed=bytes_accessed),
    )(x, dp["w1"], dp["b1"], dp["wg"], dp["bg"],
      dp["w2"], dp["b2"], dp["w3"], dp["b3"])

    x2h = out[:B, 0:H]
    x2 = out[:B, LANE:LANE + hidden2]
    q = out[:B, 2 * LANE:2 * LANE + n_actions]
    return q, x2, x2h


# ----------------------------------------------------------------------------
# THGCAgent (Pallas) — parameters initialized deterministically in-script
# ----------------------------------------------------------------------------
class THGCAgentPallas:
    def __init__(self, input_shape, mlp_hidden_dim, n_actions, key):
        assert mlp_hidden_dim == 64, "gate lane packing assumes mlp_hidden_dim == 64"
        assert n_actions <= LANE, "n_actions must fit in one 128-lane block"
        self.input_shape = input_shape
        self.mlp_hidden_dim = mlp_hidden_dim
        self.hidden_dim_2 = 64
        self.n_actions = n_actions

        keys = jax.random.split(key, 10)

        def uinit(k, shape, fan_in):
            bound = 1.0 / jnp.sqrt(fan_in)
            return jax.random.uniform(k, shape, jnp.float32, -bound, bound)

        H = mlp_hidden_dim
        H2 = self.hidden_dim_2
        # Raw PyTorch-layout parameters (kept faithful to the module; note that
        # lstm_w_hh and the f-gate rows are dead on this forward path because
        # the LSTM is always called with zero state).
        self.params = {
            "fc1_w": uinit(keys[0], (H, input_shape), input_shape),
            "fc1_b": uinit(keys[1], (H,), input_shape),
            "lstm_w_ih": uinit(keys[2], (4 * H, H), H),
            "lstm_w_hh": uinit(keys[3], (4 * H, H), H),
            "lstm_b_ih": uinit(keys[4], (4 * H,), H),
            "lstm_b_hh": uinit(keys[5], (4 * H,), H),
            "mlp2_w": uinit(keys[6], (H2, H), H),
            "mlp2_b": uinit(keys[7], (H2,), H),
            "mlp3_w": uinit(keys[8], (n_actions, H2), H2),
            "mlp3_b": uinit(keys[9], (n_actions,), H2),
        }

        # Derived kernel-friendly parameters (computed once, host-side).
        # Weights: transposed to (in, out), zero-padded to 128-lane geometry,
        # cast to bf16.  Biases: lane-dense (1, W) float32.
        p = self.params
        f32 = jnp.float32

        # fc1: (H,in) -> (in,128)
        w1 = jnp.zeros((input_shape, LANE), f32).at[:, :H].set(p["fc1_w"].T)
        b1 = jnp.zeros((1, LANE), f32).at[0, :H].set(p["fc1_b"])

        # LSTM gates: fold b_hh into b_ih; keep only i, g, o (PyTorch order
        # i,f,g,o); fuse into one (128, 256) matrix with columns [Wi|Wo|Wg|0].
        b_comb = p["lstm_b_ih"] + p["lstm_b_hh"]
        Wi = p["lstm_w_ih"][0 * H:1 * H, :].T
        Wg = p["lstm_w_ih"][2 * H:3 * H, :].T
        Wo = p["lstm_w_ih"][3 * H:4 * H, :].T
        wg = jnp.zeros((LANE, 2 * LANE), f32)
        wg = wg.at[:H, 0:H].set(Wi).at[:H, H:2 * H].set(Wo).at[:H, 2 * H:3 * H].set(Wg)
        bg = jnp.zeros((1, 2 * LANE), f32)
        bg = (bg.at[0, 0:H].set(b_comb[0 * H:1 * H])        # i
                .at[0, H:2 * H].set(b_comb[3 * H:4 * H])    # o
                .at[0, 2 * H:3 * H].set(b_comb[2 * H:3 * H]))  # g

        # MLP2: (64,H) -> (128,128); MLP3: (n_actions,64) -> (128,128)
        w2 = jnp.zeros((LANE, LANE), f32).at[:H, :H2].set(p["mlp2_w"].T)
        b2 = jnp.zeros((1, LANE), f32).at[0, :H2].set(p["mlp2_b"])
        w3 = jnp.zeros((LANE, LANE), f32).at[:H2, :n_actions].set(p["mlp3_w"].T)
        b3 = jnp.zeros((1, LANE), f32).at[0, :n_actions].set(p["mlp3_b"])

        bf16 = jnp.bfloat16
        self.derived = {
            "w1": w1.astype(bf16), "b1": b1,
            "wg": wg.astype(bf16), "bg": bg,
            "w2": w2.astype(bf16), "b2": b2,
            "w3": w3.astype(bf16), "b3": b3,
        }

        self._forward = jax.jit(functools.partial(
            _thgc_forward, H=H, hidden2=H2, n_actions=n_actions))

    def init_hidden(self, batch):
        return (jnp.zeros((batch, self.mlp_hidden_dim), jnp.float32),
                jnp.zeros((batch, self.mlp_hidden_dim), jnp.float32))

    def forward(self, inputs):
        return self._forward(inputs, self.derived)


# ----------------------------------------------------------------------------
# Pure-JAX references for the sanity check.
#   _reference_forward_bf16 mirrors the kernel's bf16-matmul / f32-accumulate
#   numerics (tight check); _reference_forward_f32 is the exact PyTorch-f32
#   semantics (loose check, bounds the bf16 cast error).
# ----------------------------------------------------------------------------
def _lstm_mlp_ref(inputs, p, dot):
    x1 = jnp.maximum(dot(inputs, p["fc1_w"].T) + p["fc1_b"], 0.0)
    H = p["fc1_w"].shape[0]
    h0 = jnp.zeros((inputs.shape[0], H), jnp.float32)
    c0 = jnp.zeros_like(h0)
    gates = (dot(x1, p["lstm_w_ih"].T) + p["lstm_b_ih"]
             + dot(h0, p["lstm_w_hh"].T) + p["lstm_b_hh"])
    i_g = jax.nn.sigmoid(gates[:, 0 * H:1 * H])
    f_g = jax.nn.sigmoid(gates[:, 1 * H:2 * H])
    g_g = jnp.tanh(gates[:, 2 * H:3 * H])
    o_g = jax.nn.sigmoid(gates[:, 3 * H:4 * H])
    c_new = f_g * c0 + i_g * g_g
    x2h = o_g * jnp.tanh(c_new)
    x2 = jnp.maximum(dot(x2h, p["mlp2_w"].T) + p["mlp2_b"], 0.0)
    q = jnp.maximum(dot(x2, p["mlp3_w"].T) + p["mlp3_b"], 0.0)
    return q, x2, x2h


def _reference_forward_bf16(inputs, p):
    def dot(a, b):
        return jnp.dot(a.astype(jnp.bfloat16), b.astype(jnp.bfloat16),
                       preferred_element_type=jnp.float32)
    return _lstm_mlp_ref(inputs, p, dot)


def _reference_forward_f32(inputs, p):
    def dot(a, b):
        return jnp.dot(a, b, preferred_element_type=jnp.float32)
    return _lstm_mlp_ref(inputs, p, dot)


# ----------------------------------------------------------------------------
if __name__ == "__main__":
    key = jax.random.PRNGKey(0)
    k_param, k_in = jax.random.split(key)

    batch = 256          # batch_size (32 envs) * n_agents (8) rows
    input_shape = 32
    mlp_hidden_dim = 64
    n_actions = 8

    agent = THGCAgentPallas(input_shape, mlp_hidden_dim, n_actions, k_param)
    inputs = jax.random.normal(k_in, (batch, input_shape), jnp.float32)

    q, x2, x2h = agent.forward(inputs)
    jax.block_until_ready((q, x2, x2h))

    assert q.shape == (batch, n_actions)
    assert x2.shape == (batch, 64)
    assert x2h.shape == (batch, mlp_hidden_dim)

    # Tight check against a reference that mirrors the kernel's bf16 matmuls.
    q_r, x2_r, x2h_r = _reference_forward_bf16(inputs, agent.params)
    assert jnp.allclose(q, q_r, atol=1e-2, rtol=1e-2)
    assert jnp.allclose(x2, x2_r, atol=1e-2, rtol=1e-2)
    assert jnp.allclose(x2h, x2h_r, atol=1e-2, rtol=1e-2)

    # Loose check against exact f32 PyTorch semantics (bounds bf16 cast error).
    q_f, x2_f, x2h_f = _reference_forward_f32(inputs, agent.params)
    assert jnp.allclose(q, q_f, atol=5e-2, rtol=5e-2)
    assert jnp.allclose(x2, x2_f, atol=5e-2, rtol=5e-2)
    assert jnp.allclose(x2h, x2h_f, atol=5e-2, rtol=5e-2)

    print("KERNEL_OK")
</pallas_src>

<mosaic_0001>
module attributes {stable_mosaic.version = 11 : i64} {
  func.func @_fused_forward_kernel(%arg0: i32, %arg1: memref<128x32xf32, #tpu.memory_space<vmem>>, %arg2: memref<32x128xbf16, #tpu.memory_space<vmem>>, %arg3: memref<1x128xf32, #tpu.memory_space<vmem>>, %arg4: memref<128x256xbf16, #tpu.memory_space<vmem>>, %arg5: memref<1x256xf32, #tpu.memory_space<vmem>>, %arg6: memref<128x128xbf16, #tpu.memory_space<vmem>>, %arg7: memref<1x128xf32, #tpu.memory_space<vmem>>, %arg8: memref<128x128xbf16, #tpu.memory_space<vmem>>, %arg9: memref<1x128xf32, #tpu.memory_space<vmem>>, %arg10: memref<128x384xf32, #tpu.memory_space<vmem>>) attributes {dimension_semantics = [#tpu.dimension_semantics<parallel>], iteration_bounds = array<i64: 2>, scalar_prefetch = 0 : i64, scratch_operands = 0 : i64, tpu.core_type = #tpu.core_type<tc>, window_params = [{transform_indices = @transform_0, window_bounds = array<i64: 128, 32>}, {pipeline_mode = #tpu.pipeline_mode<synchronous>, transform_indices = @transform_1, window_bounds = array<i64: 32, 128>}, {pipeline_mode = #tpu.pipeline_mode<synchronous>, transform_indices = @transform_2, window_bounds = array<i64: 1, 128>}, {pipeline_mode = #tpu.pipeline_mode<synchronous>, transform_indices = @transform_3, window_bounds = array<i64: 128, 256>}, {pipeline_mode = #tpu.pipeline_mode<synchronous>, transform_indices = @transform_4, window_bounds = array<i64: 1, 256>}, {pipeline_mode = #tpu.pipeline_mode<synchronous>, transform_indices = @transform_5, window_bounds = array<i64: 128, 128>}, {pipeline_mode = #tpu.pipeline_mode<synchronous>, transform_indices = @transform_6, window_bounds = array<i64: 1, 128>}, {pipeline_mode = #tpu.pipeline_mode<synchronous>, transform_indices = @transform_7, window_bounds = array<i64: 128, 128>}, {pipeline_mode = #tpu.pipeline_mode<synchronous>, transform_indices = @transform_8, window_bounds = array<i64: 1, 128>}, {transform_indices = @transform_9, window_bounds = array<i64: 128, 384>}]} {
    %c0 = arith.constant 0 : index
    %c0_0 = arith.constant 0 : index
    %0 = vector.load %arg1[%c0, %c0_0] : memref<128x32xf32, #tpu.memory_space<vmem>>, vector<128x32xf32>
    %1 = arith.truncf %0 : vector<128x32xf32> to vector<128x32xbf16>
    %c0_1 = arith.constant 0 : index
    %c0_2 = arith.constant 0 : index
    %2 = vector.load %arg2[%c0_1, %c0_2] : memref<32x128xbf16, #tpu.memory_space<vmem>>, vector<32x128xbf16>
    %cst = arith.constant dense<0.000000e+00> : vector<128x128xf32>
    %3 = tpu.matmul %1, %2, %cst {dimension_numbers = #tpu.dot_dimension_numbers<[1], [0], [0], [1], [0, 0, 1, 1], [], []>} : vector<128x32xbf16>, vector<32x128xbf16>, vector<128x128xf32> -> vector<128x128xf32>
    %c0_3 = arith.constant 0 : index
    %c0_4 = arith.constant 0 : index
    %4 = vector.load %arg3[%c0_3, %c0_4] : memref<1x128xf32, #tpu.memory_space<vmem>>, vector<1x128xf32>
    %5 = vector.broadcast %4 : vector<1x128xf32> to vector<128x128xf32>
    %6 = arith.addf %3, %5 : vector<128x128xf32>
    %cst_5 = arith.constant 0.000000e+00 : f32
    %7 = vector.broadcast %cst_5 : f32 to vector<128x128xf32>
    %8 = arith.maximumf %6, %7 : vector<128x128xf32>
    %9 = arith.truncf %8 : vector<128x128xf32> to vector<128x128xbf16>
    %c0_6 = arith.constant 0 : index
    %c0_7 = arith.constant 0 : index
    %10 = vector.load %arg4[%c0_6, %c0_7] : memref<128x256xbf16, #tpu.memory_space<vmem>>, vector<128x256xbf16>
    %cst_8 = arith.constant dense<0.000000e+00> : vector<128x256xf32>
    %11 = tpu.matmul %9, %10, %cst_8 {dimension_numbers = #tpu.dot_dimension_numbers<[1], [0], [0], [1], [0, 0, 1, 1], [], []>} : vector<128x128xbf16>, vector<128x256xbf16>, vector<128x256xf32> -> vector<128x256xf32>
    %c0_9 = arith.constant 0 : index
    %c0_10 = arith.constant 0 : index
    %12 = vector.load %arg5[%c0_9, %c0_10] : memref<1x256xf32, #tpu.memory_space<vmem>>, vector<1x256xf32>
    %13 = vector.broadcast %12 : vector<1x256xf32> to vector<128x256xf32>
    %14 = arith.addf %11, %13 : vector<128x256xf32>
    %15 = vector.extract_strided_slice %14 {offsets = [0, 0], sizes = [128, 128], strides = [1, 1]} : vector<128x256xf32> to vector<128x128xf32>
    %16 = arith.negf %15 : vector<128x128xf32>
    %17 = math.exp %16 : vector<128x128xf32>
    %cst_11 = arith.constant 1.000000e+00 : f32
    %18 = vector.broadcast %cst_11 : f32 to vector<128x128xf32>
    %19 = arith.addf %18, %17 : vector<128x128xf32>
    %20 = arith.divf %18, %19 : vector<128x128xf32>
    %21 = vector.extract_strided_slice %14 {offsets = [0, 128], sizes = [128, 128], strides = [1, 1]} : vector<128x256xf32> to vector<128x128xf32>
    %22 = math.tanh %21 : vector<128x128xf32>
    %23 = arith.mulf %20, %22 : vector<128x128xf32>
    %c64_i32 = arith.constant 64 : i32
    %24 = tpu.dynamic_rotate %20 by %c64_i32 dim 1 : vector<128x128xf32>, i32 -> vector<128x128xf32>
    %25 = math.tanh %23 : vector<128x128xf32>
    %26 = arith.mulf %25, %24 : vector<128x128xf32>
    %27 = arith.truncf %26 : vector<128x128xf32> to vector<128x128xbf16>
    %c0_12 = arith.constant 0 : index
    %c0_13 = arith.constant 0 : index
    %28 = vector.load %arg6[%c0_12, %c0_13] : memref<128x128xbf16, #tpu.memory_space<vmem>>, vector<128x128xbf16>
    %cst_14 = arith.constant dense<0.000000e+00> : vector<128x128xf32>
    %29 = tpu.matmul %27, %28, %cst_14 {dimension_numbers = #tpu.dot_dimension_numbers<[1], [0], [0], [1], [0, 0, 1, 1], [], []>} : vector<128x128xbf16>, vector<128x128xbf16>, vector<128x128xf32> -> vector<128x128xf32>
    %c0_15 = arith.constant 0 : index
    %c0_16 = arith.constant 0 : index
    %30 = vector.load %arg7[%c0_15, %c0_16] : memref<1x128xf32, #tpu.memory_space<vmem>>, vector<1x128xf32>
    %31 = vector.broadcast %30 : vector<1x128xf32> to vector<128x128xf32>
    %32 = arith.addf %29, %31 : vector<128x128xf32>
    %cst_17 = arith.constant 0.000000e+00 : f32
    %33 = vector.broadcast %cst_17 : f32 to vector<128x128xf32>
    %34 = arith.maximumf %32, %33 : vector<128x128xf32>
    %35 = arith.truncf %34 : vector<128x128xf32> to vector<128x128xbf16>
    %c0_18 = arith.constant 0 : index
    %c0_19 = arith.constant 0 : index
    %36 = vector.load %arg8[%c0_18, %c0_19] : memref<128x128xbf16, #tpu.memory_space<vmem>>, vector<128x128xbf16>
    %cst_20 = arith.constant dense<0.000000e+00> : vector<128x128xf32>
    %37 = tpu.matmul %35, %36, %cst_20 {dimension_numbers = #tpu.dot_dimension_numbers<[1], [0], [0], [1], [0, 0, 1, 1], [], []>} : vector<128x128xbf16>, vector<128x128xbf16>, vector<128x128xf32> -> vector<128x128xf32>
    %c0_21 = arith.constant 0 : index
    %c0_22 = arith.constant 0 : index
    %38 = vector.load %arg9[%c0_21, %c0_22] : memref<1x128xf32, #tpu.memory_space<vmem>>, vector<1x128xf32>
    %39 = vector.broadcast %38 : vector<1x128xf32> to vector<128x128xf32>
    %40 = arith.addf %37, %39 : vector<128x128xf32>
    %cst_23 = arith.constant 0.000000e+00 : f32
    %41 = vector.broadcast %cst_23 : f32 to vector<128x128xf32>
    %42 = arith.maximumf %40, %41 : vector<128x128xf32>
    %c0_24 = arith.constant 0 : index
    %c0_25 = arith.constant 0 : index
    %43 = vector.load %arg10[%c0_24, %c0_25] : memref<128x384xf32, #tpu.memory_space<vmem>>, vector<128x128xf32>
    tpu.vector_store %arg10[%c0_24, %c0_25], %26 {strides = array<i32>} : memref<128x384xf32, #tpu.memory_space<vmem>>, vector<128x128xf32>,
    %c0_26 = arith.constant 0 : index
    %c128 = arith.constant 128 : index
    %44 = vector.load %arg10[%c0_26, %c128] : memref<128x384xf32, #tpu.memory_space<vmem>>, vector<128x128xf32>
    tpu.vector_store %arg10[%c0_26, %c128], %34 {strides = array<i32>} : memref<128x384xf32, #tpu.memory_space<vmem>>, vector<128x128xf32>,
    %c0_27 = arith.constant 0 : index
    %c256 = arith.constant 256 : index
    %45 = vector.load %arg10[%c0_27, %c256] : memref<128x384xf32, #tpu.memory_space<vmem>>, vector<128x128xf32>
    tpu.vector_store %arg10[%c0_27, %c256], %42 {strides = array<i32>} : memref<128x384xf32, #tpu.memory_space<vmem>>, vector<128x128xf32>,
    return
  }
  func.func @transform_0(%arg0: i32) -> (i32, i32) {
    %c0_i32 = arith.constant 0 : i32
    %c0_i32_0 = arith.constant 0 : i32
    return %arg0, %c0_i32 : i32, i32
  }
  func.func @transform_1(%arg0: i32) -> (i32, i32) {
    %c0_i32 = arith.constant 0 : i32
    %c0_i32_0 = arith.constant 0 : i32
    %c0_i32_1 = arith.constant 0 : i32
    return %c0_i32, %c0_i32_0 : i32, i32
  }
  func.func @transform_2(%arg0: i32) -> (i32, i32) {
    %c0_i32 = arith.constant 0 : i32
    %c0_i32_0 = arith.constant 0 : i32
    %c0_i32_1 = arith.constant 0 : i32
    return %c0_i32, %c0_i32_0 : i32, i32
  }
  func.func @transform_3(%arg0: i32) -> (i32, i32) {
    %c0_i32 = arith.constant 0 : i32
    %c0_i32_0 = arith.constant 0 : i32
    %c0_i32_1 = arith.constant 0 : i32
    return %c0_i32, %c0_i32_0 : i32, i32
  }
  func.func @transform_4(%arg0: i32) -> (i32, i32) {
    %c0_i32 = arith.constant 0 : i32
    %c0_i32_0 = arith.constant 0 : i32
    %c0_i32_1 = arith.constant 0 : i32
    return %c0_i32, %c0_i32_0 : i32, i32
  }
  func.func @transform_5(%arg0: i32) -> (i32, i32) {
    %c0_i32 = arith.constant 0 : i32
    %c0_i32_0 = arith.constant 0 : i32
    %c0_i32_1 = arith.constant 0 : i32
    return %c0_i32, %c0_i32_0 : i32, i32
  }
  func.func @transform_6(%arg0: i32) -> (i32, i32) {
    %c0_i32 = arith.constant 0 : i32
    %c0_i32_0 = arith.constant 0 : i32
    %c0_i32_1 = arith.constant 0 : i32
    return %c0_i32, %c0_i32_0 : i32, i32
  }
  func.func @transform_7(%arg0: i32) -> (i32, i32) {
    %c0_i32 = arith.constant 0 : i32
    %c0_i32_0 = arith.constant 0 : i32
    %c0_i32_1 = arith.constant 0 : i32
    return %c0_i32, %c0_i32_0 : i32, i32
  }
  func.func @transform_8(%arg0: i32) -> (i32, i32) {
    %c0_i32 = arith.constant 0 : i32
    %c0_i32_0 = arith.constant 0 : i32
    %c0_i32_1 = arith.constant 0 : i32
    return %c0_i32, %c0_i32_0 : i32, i32
  }
  func.func @transform_9(%arg0: i32) -> (i32, i32) {
    %c0_i32 = arith.constant 0 : i32
    %c0_i32_0 = arith.constant 0 : i32
    return %arg0, %c0_i32 : i32, i32
  }
}

</mosaic_0001>

<bundles_post_ra>
// kernel: _thgc_forward.1
= control target key start
LH: loop header
LB: loop body
LE: loop exit
PB: predicated region body
PF: predicated region fallthrough
CT: control target
= control target key end

     0   :  { %s1874_s30 = smov 0   ;;  %s2211_s0 = inlined_call_operand.vmem [shape: f32[256,32], index: 0, kind: input, shape index: {}]   ;;  %s2212_s1 = inlined_call_operand.vmem [shape: bf16[32,128], index: 1, kind: input, shape index: {}]   ;;  %s2213_s2 = inlined_call_operand.vmem [shape: f32[1,128], index: 2, kind: input, shape index: {}]   ;;  %s2214_s3 = inlined_call_operand.vmem [shape: bf16[128,256], index: 3, kind: input, shape index: {}]   ;;  %s2215_s4 = inlined_call_operand.vmem [shape: f32[1,256], index: 4, kind: input, shape index: {}]   ;;  %s2216_s5 = inlined_call_operand.vmem [shape: bf16[128,128], index: 5, kind: input, shape index: {}]   ;;  %s2217_s6 = inlined_call_operand.vmem [shape: f32[1,128], index: 6, kind: input, shape index: {}]   ;;  %s2218_s7 = inlined_call_operand.vmem [shape: bf16[128,128], index: 7, kind: input, shape index: {}]   ;;  %s2219_s8 = inlined_call_operand.vmem [shape: f32[1,128], index: 8, kind: input, shape index: {}]   ;;  %s2220_s9 = inlined_call_operand.vmem [shape: f32[256,384], index: 9, kind: output, shape index: {}]  }
   0x1 LB: > { %s1435_s10 = sadd.s32 4294967295, %s1820_s30   ;;  %p1439_p0 = scmp.ge.s32.totalorder %s1820_s30, 1  ;;  %s1820_s30 = sphi %s1874_s30, %s19_s30  }
   0x2   : > { %p288_p1 = scmp.lt.s32.totalorder %s1820_s30, 3 }
   0x4   : > { %p289_p2 = pnand %p1439_p0, %p288_p1 }
   0x5   : > { %v1644_v0 = vld [vmem:[%s2212_s1] sm:$0xff] (!%p289_p2)   ;;  %s1440_s13 = sshll.u32 (!%p289_p2), %s1435_s10, 4  ;;  %v1645_v1 = vld [vmem:[%s2212_s1 + $0x8] sm:$0xff] (!%p289_p2)   ;;  %v1649_v4 = vld [vmem:[%s2214_s3 + $0x14] ss:$8 sps:$4 sm:$0xff] (!%p289_p2)   ;;  %vm386_vm0 = vcmask (!%p289_p2), 261120  }
   0x6   : > { %292 = sbr.rel (%p289_p2) target bundleno = 1100 (0x44c), region = 56  ;;  %p326_p3 = scmp.lt.s32.totalorder (!%p289_p2), %s1440_s13, 31  ;;  %1549 = vmatprep.subr.bf16.mxu0 (!%p289_p2), %v1644_v0  ;;  %v1646_v2 = vld [vmem:[%s2214_s3 + $0x4] ss:$8 sps:$4 sm:$0xff] (!%p289_p2)   ;;  %v1648_v3 = vld [vmem:[%s2214_s3] ss:$8 sps:$4 sm:$0xff] (!%p289_p2)  }
   0x7   : > { %1550 = vmatpush3.bf16.msra.mxu0 (!%p289_p2), %v1644_v0  ;;  %640 = vmatprep.subr.bf16.mxu1 (!%p289_p2), %v1646_v2  ;;  %v1651_v5 = vld [vmem:[%s2214_s3 + $0x10] ss:$8 sps:$4 sm:$0xff] (!%p289_p2)   ;;  %v1652_v6 = vld [vmem:[%s2214_s3 + $0x24] ss:$8 sps:$4 sm:$0xff] (!%p289_p2)   ;;  %v1654_v16 = vld [vmem:[%s2214_s3 + $0x20] ss:$8 sps:$4 sm:$0xff] (!%p289_p2)  }
   0x8   : > { %1551 = vmatprep.subr.bf16.mxu0 (!%p289_p2), %v1645_v1  ;;  %641 = vmatpush1.bf16.msra.mxu1 (!%p289_p2), %v1648_v3  ;;  %v1655_v17 = vld [vmem:[%s2214_s3 + $0x34] ss:$8 sps:$4 sm:$0xff] (!%p289_p2)   ;;  %v1657_v22 = vld [vmem:[%s2214_s3 + $0x30] ss:$8 sps:$4 sm:$0xff] (!%p289_p2)   ;;  %v1658_v23 = vld [vmem:[%s2214_s3 + $0x44] ss:$8 sps:$4 sm:$0xff] (!%p289_p2)  }
   0x9   : > { %642 = vmatprep.subr.bf16.mxu1 (!%p289_p2), %v1649_v4  ;;  %v1660_v25 = vld [vmem:[%s2214_s3 + $0x40] ss:$8 sps:$4 sm:$0xff] (!%p289_p2)   ;;  %v1661_v27 = vld [vmem:[%s2214_s3 + $0x54] ss:$8 sps:$4 sm:$0xff] (!%p289_p2)   ;;  %v1663_v32 = vld [vmem:[%s2214_s3 + $0x50] ss:$8 sps:$4 sm:$0xff] (!%p289_p2)  }
   0xa   : > { %v1664_v38 = vld [vmem:[%s2214_s3 + $0x64] ss:$8 sps:$4 sm:$0xff] (!%p289_p2)   ;;  %v1666_v39 = vld [vmem:[%s2214_s3 + $0x60] ss:$8 sps:$4 sm:$0xff] (!%p289_p2)   ;;  %v1667_v40 = vld [vmem:[%s2214_s3 + $0x74] ss:$8 sps:$4 sm:$0xff] (!%p289_p2)  }
   0xb   : > { %1552 = vmatpush3.bf16.msra.mxu0 (!%p289_p2), %v1645_v1  ;;  %v1669_v41 = vld [vmem:[%s2214_s3 + $0x70] ss:$8 sps:$4 sm:$0xff] (!%p289_p2)   ;;  %v1822_v42 = vmov (!%p289_p2), 0   ;;  %v1444_v43 = vld [vmem:[%s2213_s2] ss:$0 sm:$0xff] (!%p289_p2)  ;;  %s1823_s15 = smov (!%p289_p2), 64  }
   0xc   : > { %643 = vmatpush1.bf16.msra.mxu1 (!%p289_p2), %v1651_v5  ;;  %672 = vmatprep.mubr.bf16.mxu1 (!%p289_p2), %v1822_v42 }
   0xd   : > { %s2222_s13 = smov (!%p326_p3, %s1440_s13), 31  ;;  %644 = vmatprep.subr.bf16.mxu1 %v1652_v6 }
   0xe   : > { %s1441_s22 = sshll.u32 %s2222_s13, 3  ;;  %s1633_s18 = smul.u32 24, %s2222_s13 }
   0xf   : > { %s1906_s27 = scalar_lea.vmem %s2211_s0, %s1441_s22 }
  0x10   : > { %v339_v7 = vld [vmem:[%s1906_s27] sm:$0xff]  ;;  %v340_v8 = vld [vmem:[%s1906_s27 + $0x8] sm:$0xff]  ;;  %v341_v9 = vld [vmem:[%s1906_s27 + $0x10] sm:$0xff]  ;;  %645 = vmatpush1.bf16.msra.mxu1 %v1654_v16  ;;  %s2100_s21 = scalar_lea.vmem %s2220_s9, %s1633_s18 }
  0x11   : > { %v355_v10 = vpack.c.bf16 %v340_v8, %v339_v7  ;;  %v342_v11 = vld [vmem:[%s1906_s27 + $0x18] sm:$0xff]  ;;  %v343_v12 = vld [vmem:[%s1906_s27 + $0x20] sm:$0xff]  ;;  %v344_v13 = vld [vmem:[%s1906_s27 + $0x28] sm:$0xff]  ;;  %646 = vmatprep.subr.bf16.mxu1 %v1655_v17 }
  0x12   : > { %v356_v14 = vpack.c.bf16 %v342_v11, %v341_v9  ;;  %v357_v15 = vpack.c.bf16 %v344_v13, %v343_v12  ;;  %v345_v18 = vld [vmem:[%s1906_s27 + $0x30] sm:$0xff]  ;;  %v346_v19 = vld [vmem:[%s1906_s27 + $0x38] sm:$0xff]  ;;  %v347_v20 = vld [vmem:[%s1906_s27 + $0x40] sm:$0xff] }
  0x13   : > { %1553 = vmatprep.mubr.msk.bf16.mxu0 %vm386_vm0, %v355_v10  ;;  %v348_v21 = vld [vmem:[%s1906_s27 + $0x48] sm:$0xff]  ;;  %v358_v24 = vpack.c.bf16 %v346_v19, %v345_v18  ;;  %v349_v28 = vld [vmem:[%s1906_s27 + $0x50] sm:$0xff]  ;;  %v350_v29 = vld [vmem:[%s1906_s27 + $0x58] sm:$0xff] }
  0x14   : > { %1554 = vmatmul.mubr.msk.bf16.vlgmr.msra.gmra.mrb[0].mxu0 %vm386_vm0, %v356_v14  ;;  %v359_v26 = vpack.c.bf16 %v348_v21, %v347_v20  ;;  %647 = vmatpush1.bf16.msra.mxu1 %v1657_v22  ;;  %v351_v30 = vld [vmem:[%s1906_s27 + $0x60] sm:$0xff]  ;;  %v352_v31 = vld [vmem:[%s1906_s27 + $0x68] sm:$0xff]  ;;  %v360_v33 = vpack.c.bf16 %v350_v29, %v349_v28  ;;  %v353_v35 = vld [vmem:[%s1906_s27 + $0x70] sm:$0xff] }
  0x15   : > { %1557 = vmatprep.mubr.msk.bf16.mxu0 %vm386_vm0, %v357_v15  ;;  %648 = vmatprep.subr.bf16.mxu1 %v1658_v23  ;;  %v361_v34 = vpack.c.bf16 %v352_v31, %v351_v30  ;;  %v354_v36 = vld [vmem:[%s1906_s27 + $0x78] sm:$0xff] }
  0x16   : > { %v362_v37 = vpack.c.bf16 %v354_v36, %v353_v35  ;;  %v1670_v36 = vld [vmem:[%s2216_s5] sm:$0xff]  }
  0x17   : > { %1569 = vmatprep.subr.bf16.mxu0 %v1670_v36 }
  0x18   : > { %649 = vmatpush1.bf16.msra.mxu1 %v1660_v25  ;;  %1570 = vmatpush3.bf16.msra.mxu0 %v1670_v36 }
  0x19   : > { %650 = vmatprep.subr.bf16.mxu1 %v1661_v27 }
  0x1c   : > { %1558 = vmatmul.mubr.msk.bf16.gmra.mrb[4].mxu0 %vm386_vm0, %v358_v24  ;;  %651 = vmatpush1.bf16.msra.mxu1 %v1663_v32 }
  0x1d   : > { %1561 = vmatprep.mubr.msk.bf16.mxu0 %vm386_vm0, %v359_v26  ;;  %652 = vmatprep.subr.bf16.mxu1 %v1664_v38  ;;  %v1672_v38 = vld [vmem:[%s2216_s5 + $0x10] sm:$0xff]  }
  0x20   : > { %653 = vmatpush1.bf16.msra.mxu1 %v1666_v39  ;;  %v1673_v39 = vld [vmem:[%s2216_s5 + $0x18] sm:$0xff]  }
  0x21   : > { %654 = vmatprep.subr.bf16.mxu1 %v1667_v40  ;;  %v550_v40 = vlaneseq }
  0x24   : > { %1562 = vmatmul.mubr.msk.bf16.gmra.mrb[8].mxu0 %vm386_vm0, %v360_v33  ;;  %655 = vmatpush1.bf16.msra.mxu1 %v1669_v41  ;;  %v551_v41 = vshrl.u32 %v550_v40, 7 }
  0x25   : > { %1565 = vmatprep.mubr.msk.bf16.mxu0 %vm386_vm0, %v361_v34 }
  0x2c   : > { %1566 = vmatmul.mubr.msk.bf16.gmra.mrb[12].mxu0 %vm386_vm0, %v362_v37  ;;  %v1671_v37 = vld [vmem:[%s2216_s5 + $0x8] sm:$0xff]  }
  0x2d   : > { %1571 = vmatprep.subr.bf16.mxu0 %v1671_v37 }
  0x2e   : > { %1572 = vmatpush3.bf16.msra.mxu0 %v1671_v37 }
  0x2f   : > { %1573 = vmatprep.subr.bf16.mxu0 %v1672_v38 }
  0x32   : > { %1574 = vmatpush3.bf16.msra.mxu0 %v1672_v38 }
  0x33   : > { %1575 = vmatprep.subr.bf16.mxu0 %v1673_v39 }
  0x36   : > { %1576 = vmatpush3.bf16.msra.mxu0 %v1673_v39 }
  0xe7   : > { %v1555_v44 = vpop.f32.mrb[0].mxu0 }
  0xe8   : > { %v454_v45 = vadd.f32 %v1555_v44, %v1444_v43  ;;  %v445_v46 = vpop.f32.mrb[1].mxu0  ;;  %v556_v44 = vsub.s32 1, %v551_v41 }
  0xe9   : > { %v446_v47 = vadd.f32 %v1444_v43, %v445_v46  ;;  %v1556_v48 = vpop.f32.mrb[2].mxu0 }
  0xea   : > { %v457_v49 = vadd.f32 %v1556_v48, %v1444_v43  ;;  %v448_v50 = vpop.f32.mrb[3].mxu0  ;;  %v510_v52 = vmax.f32 %v454_v45, 0.0 }
  0xeb   : > { %v449_v51 = vadd.f32 %v1444_v43, %v448_v50  ;;  %v508_v54 = vmax.f32 %v446_v47, 0.0 }
  0xec   : > { %v511_v53 = vmax.f32 %v457_v49, 0.0 }
  0xed   : > { %v509_v55 = vmax.f32 %v449_v51, 0.0 }
  0xee   : > { %v525_v56 = vpack.c.bf16 %v511_v53, %v510_v52 }
  0xef   : > { %v524_v57 = vpack.c.bf16 %v509_v55, %v508_v54  ;;  %v1559_v58 = vpop.f32.mrb[4].mxu0 }
  0xf0   : > { %v470_v59 = vadd.f32 %v1559_v58, %v1444_v43  ;;  %v461_v60 = vpop.f32.mrb[5].mxu0 }
  0xf1   : > { %673 = vmatmul.mubr.bf16.vlgmr.msra.gmra.mrb[0].mxu1 %v524_v57  ;;  %v462_v61 = vadd.f32 %v1444_v43, %v461_v60  ;;  %v1560_v62 = vpop.f32.mrb[6].mxu0 }
  0xf2   : > { %v514_v63 = vmax.f32 %v470_v59, 0.0  ;;  %v473_v0 = vadd.f32 %v1560_v62, %v1444_v43  ;;  %v464_v1 = vpop.f32.mrb[7].mxu0  ;;  %682 = vmatprep.mubr.bf16.mxu1 %v1822_v42 }
  0xf3   : > { %v512_v2 = vmax.f32 %v462_v61, 0.0  ;;  %v465_v3 = vadd.f32 %v1444_v43, %v464_v1 }
  0xf4   : > { %v515_v4 = vmax.f32 %v473_v0, 0.0 }
  0xf5   : > { %v513_v5 = vmax.f32 %v465_v3, 0.0 }
  0xf6   : > { %v527_v6 = vpack.c.bf16 %v515_v4, %v514_v63 }
  0xf7   : > { %v526_v7 = vpack.c.bf16 %v513_v5, %v512_v2  ;;  %v1563_v8 = vpop.f32.mrb[8].mxu0 }
  0xf8   : > { %v486_v9 = vadd.f32 %v1563_v8, %v1444_v43  ;;  %v477_v10 = vpop.f32.mrb[9].mxu0 }
  0xf9   : > { %683 = vmatmul.mubr.bf16.gmra.mrb[4].mxu1 %v525_v56  ;;  %v478_v11 = vadd.f32 %v1444_v43, %v477_v10  ;;  %v1564_v12 = vpop.f32.mrb[10].mxu0 }
  0xfa   : > { %692 = vmatprep.mubr.bf16.mxu1 %v1822_v42  ;;  %v518_v13 = vmax.f32 %v486_v9, 0.0  ;;  %v489_v14 = vadd.f32 %v1564_v12, %v1444_v43  ;;  %v480_v15 = vpop.f32.mrb[11].mxu0 }
  0xfb   : > { %v516_v16 = vmax.f32 %v478_v11, 0.0  ;;  %v481_v17 = vadd.f32 %v1444_v43, %v480_v15 }
  0xfc   : > { %v519_v18 = vmax.f32 %v489_v14, 0.0 }
  0xfd   : > { %v517_v19 = vmax.f32 %v481_v17, 0.0  ;;  %v1675_v17 = vld [vmem:[%s2216_s5 + $0x28] sm:$0xff]  }
  0xfe   : > { %v529_v20 = vpack.c.bf16 %v519_v18, %v518_v13 }
  0xff   : > { %v528_v21 = vpack.c.bf16 %v517_v19, %v516_v16  ;;  %v1567_v22 = vpop.f32.mrb[12].mxu0 }
 0x100   : > { %v502_v23 = vadd.f32 %v1567_v22, %v1444_v43  ;;  %v493_v24 = vpop.f32.mrb[13].mxu0  ;;  %v1676_v22 = vld [vmem:[%s2216_s5 + $0x30] sm:$0xff]  }
 0x101   : > { %693 = vmatmul.mubr.bf16.gmra.mrb[8].mxu1 %v526_v7  ;;  %v494_v25 = vadd.f32 %v1444_v43, %v493_v24  ;;  %v1568_v26 = vpop.f32.mrb[14].mxu0 }
 0x102   : > { %702 = vmatprep.mubr.bf16.mxu1 %v1822_v42  ;;  %v522_v27 = vmax.f32 %v502_v23, 0.0  ;;  %v505_v28 = vadd.f32 %v1568_v26, %v1444_v43  ;;  %v496_v29 = vpop.f32.mrb[15].mxu0 }
 0x103   : > { %v520_v30 = vmax.f32 %v494_v25, 0.0  ;;  %v497_v31 = vadd.f32 %v1444_v43, %v496_v29  ;;  %v548_v43 = vld [vmem:[%s2215_s4] sm:$0x3] }
 0x104   : > { %v523_v32 = vmax.f32 %v505_v28, 0.0  ;;  %v1996_v46 = vrot.slane %v548_v43, %v556_v44 }
 0x105   : > { %v521_v33 = vmax.f32 %v497_v31, 0.0 }
 0x106   : > { %v531_v34 = vpack.c.bf16 %v523_v32, %v522_v27 }
 0x107   : > { %v530_v35 = vpack.c.bf16 %v521_v33, %v520_v30 }
 0x109   : > { %703 = vmatmul.mubr.bf16.gmra.mrb[12].mxu1 %v527_v6  ;;  %v1674_v6 = vld [vmem:[%s2216_s5 + $0x20] sm:$0xff]  }
 0x10a   : > { %712 = vmatprep.mubr.bf16.mxu1 %v1822_v42  ;;  %1577 = vmatprep.subr.bf16.mxu0 %v1674_v6 }
 0x10b   : > { %1578 = vmatpush3.bf16.msra.mxu0 %v1674_v6 }
 0x10c   : > { %1579 = vmatprep.subr.bf16.mxu0 %v1675_v17 }
 0x10f   : > { %1580 = vmatpush3.bf16.msra.mxu0 %v1675_v17 }
 0x110   : > { %1581 = vmatprep.subr.bf16.mxu0 %v1676_v22 }
 0x111   : > { %713 = vmatmul.mubr.bf16.gmra.mrb[16].mxu1 %v528_v21 }
 0x112   : > { %722 = vmatprep.mubr.bf16.mxu1 %v1822_v42 }
 0x113   : > { %1582 = vmatpush3.bf16.msra.mxu0 %v1676_v22 }
 0x119   : > { %723 = vmatmul.mubr.bf16.gmra.mrb[20].mxu1 %v529_v20 }
 0x11a   : > { %732 = vmatprep.mubr.bf16.mxu1 %v1822_v42 }
 0x121   : > { %733 = vmatmul.mubr.bf16.gmra.mrb[24].mxu1 %v530_v35  ;;  %v1677_v35 = vld [vmem:[%s2216_s5 + $0x38] sm:$0xff]  }
 0x122   : > { %742 = vmatprep.mubr.bf16.mxu1 %v1822_v42  ;;  %v552_v42 = vsub.s32 0, %v551_v41  ;;  %1583 = vmatprep.subr.bf16.mxu0 %v1677_v35 }
 0x123   : > { %1584 = vmatpush3.bf16.msra.mxu0 %v1677_v35 }
 0x124   : > { %v1994_v45 = vrot.slane %v548_v43, %v552_v42 }
 0x129   : > { %743 = vmatmul.mubr.bf16.gmra.mrb[28].mxu1 %v531_v34 }
 0x1c4   : > { %v674_v47 = vpop.f32.mrb[0].mxu1 }
 0x1c5   : > { %v675_v48 = vadd.f32 %v674_v47, %v1994_v45  ;;  %v676_v49 = vpop.f32.mrb[1].mxu1 }
 0x1c6   : > { %v677_v50 = vadd.f32 %v676_v49, %v1996_v46  ;;  %v678_v51 = vpop.f32.mrb[2].mxu1 }
 0x1c7   : > { %v1471_v52 = vmul.f32 -1.442695, %v675_v48  ;;  %v679_v53 = vadd.f32 %v678_v51, %v1994_v45  ;;  %v680_v54 = vpop.f32.mrb[3].mxu1 }
 0x1c8   : > { %v681_v55 = vadd.f32 %v680_v54, %v1996_v46 }
 0x1c9   : > { %1686 = vpow2.f32 %v1471_v52  ;;  %v1472_v56 = vmul.f32 -1.442695, %v679_v53 }
 0x1cb   : > { %1688 = vpow2.f32 %v1472_v56 }
 0x1cc   : > { %v684_v57 = vpop.f32.mrb[4].mxu1 }
 0x1cd   : > { %v685_v58 = vadd.f32 %v684_v57, %v1994_v45  ;;  %v686_v59 = vpop.f32.mrb[5].mxu1 }
 0x1ce   : > { %v687_v60 = vadd.f32 %v686_v59, %v1996_v46  ;;  %v688_v61 = vpop.f32.mrb[6].mxu1 }
 0x1cf   : > { %v1473_v62 = vmul.f32 -1.442695, %v685_v58  ;;  %v689_v63 = vadd.f32 %v688_v61, %v1994_v45  ;;  %v690_v0 = vpop.f32.mrb[7].mxu1 }
 0x1d0   : > { %v691_v1 = vadd.f32 %v690_v0, %v1996_v46 }
 0x1d1   : > { %1690 = vpow2.f32 %v1473_v62  ;;  %v1474_v2 = vmul.f32 -1.442695, %v689_v63 }
 0x1d3   : > { %v1687_v3 = vpop.eup %1686  ;;  %1692 = vpow2.f32 %v1474_v2 }
 0x1d4   : > { %v801_v4 = vadd.f32 1.0, %v1687_v3  ;;  %v694_v5 = vpop.f32.mrb[8].mxu1  ;;  %1694 = vtanh.f32 %v677_v50 }
 0x1d5   : > { %v1689_v7 = vpop.eup %1688  ;;  %v695_v8 = vadd.f32 %v694_v5, %v1994_v45  ;;  %v696_v9 = vpop.f32.mrb[9].mxu1 }
 0x1d6   : > { %1696 = vrcp.f32 %v801_v4  ;;  %v802_v10 = vadd.f32 1.0, %v1689_v7  ;;  %v697_v11 = vadd.f32 %v696_v9, %v1996_v46  ;;  %v698_v12 = vpop.f32.mrb[10].mxu1 }
 0x1d7   : > { %1698 = vtanh.f32 %v681_v55  ;;  %v1475_v13 = vmul.f32 -1.442695, %v695_v8  ;;  %v699_v14 = vadd.f32 %v698_v12, %v1994_v45  ;;  %v700_v15 = vpop.f32.mrb[11].mxu1 }
 0x1d8   : > { %1700 = vrcp.f32 %v802_v10  ;;  %v701_v16 = vadd.f32 %v700_v15, %v1996_v46 }
 0x1d9   : > { %1702 = vpow2.f32 %v1475_v13  ;;  %v1476_v18 = vmul.f32 -1.442695, %v699_v14 }
 0x1db   : > { %v1691_v19 = vpop.eup %1690  ;;  %1704 = vpow2.f32 %v1476_v18 }
 0x1dc   : > { %v803_v20 = vadd.f32 1.0, %v1691_v19  ;;  %v704_v21 = vpop.f32.mrb[12].mxu1  ;;  %1706 = vtanh.f32 %v687_v60 }
 0x1dd   : > { %v1693_v23 = vpop.eup %1692  ;;  %v705_v24 = vadd.f32 %v704_v21, %v1994_v45  ;;  %v706_v25 = vpop.f32.mrb[13].mxu1 }
 0x1de   : > { %1708 = vrcp.f32 %v803_v20  ;;  %v804_v26 = vadd.f32 1.0, %v1693_v23  ;;  %v707_v27 = vadd.f32 %v706_v25, %v1996_v46  ;;  %v708_v28 = vpop.f32.mrb[14].mxu1  ;;  %v1695_v29 = vpop.eup %1694 }
 0x1df   : > { %1710 = vtanh.f32 %v691_v1  ;;  %v1477_v30 = vmul.f32 -1.442695, %v705_v24  ;;  %v709_v31 = vadd.f32 %v708_v28, %v1994_v45  ;;  %v710_v32 = vpop.f32.mrb[15].mxu1 }
 0x1e0   : > { %v1697_v33 = vpop.eup %1696  ;;  %1712 = vrcp.f32 %v804_v26  ;;  %v711_v34 = vadd.f32 %v710_v32, %v1996_v46 }
 0x1e1   : > { %v1699_v36 = vpop.eup %1698  ;;  %1714 = vpow2.f32 %v1477_v30  ;;  %v1478_v37 = vmul.f32 -1.442695, %v709_v31  ;;  %881 = vrot.lane.b32.xlu0 %v1697_v33, %s1823_s15  ;;  %v2027_v38 = vmul.f32 %v1697_v33, %v1695_v29 }
 0x1e2   : > { %v1701_v39 = vpop.eup %1700 }
 0x1e3   : > { %v1703_v40 = vpop.eup %1702  ;;  %1716 = vpow2.f32 %v1478_v37  ;;  %v2029_v41 = vmul.f32 %v1701_v39, %v1699_v36 }
 0x1e4   : > { %v805_v42 = vadd.f32 1.0, %v1703_v40  ;;  %v714_v43 = vpop.f32.mrb[16].mxu1  ;;  %1718 = vtanh.f32 %v697_v11 }
 0x1e5   : > { %v1705_v44 = vpop.eup %1704  ;;  %v715_v47 = vadd.f32 %v714_v43, %v1994_v45  ;;  %v716_v48 = vpop.f32.mrb[17].mxu1  ;;  %883 = vrot.lane.b32.xlu0 %v1701_v39, %s1823_s15 }
 0x1e6   : > { %1720 = vrcp.f32 %v805_v42  ;;  %v806_v49 = vadd.f32 1.0, %v1705_v44  ;;  %v717_v50 = vadd.f32 %v716_v48, %v1996_v46  ;;  %v718_v51 = vpop.f32.mrb[18].mxu1  ;;  %v1707_v52 = vpop.eup %1706 }
 0x1e7   : > { %1722 = vtanh.f32 %v701_v16  ;;  %v1479_v53 = vmul.f32 -1.442695, %v715_v47  ;;  %v719_v54 = vadd.f32 %v718_v51, %v1994_v45  ;;  %v720_v55 = vpop.f32.mrb[19].mxu1 }
 0x1e8   : > { %v1709_v56 = vpop.eup %1708  ;;  %1724 = vrcp.f32 %v806_v49  ;;  %v721_v57 = vadd.f32 %v720_v55, %v1996_v46 }
 0x1e9   : > { %v1711_v58 = vpop.eup %1710  ;;  %1726 = vpow2.f32 %v1479_v53  ;;  %v1480_v59 = vmul.f32 -1.442695, %v719_v54  ;;  %885 = vrot.lane.b32.xlu1 %v1709_v56, %s1823_s15  ;;  %v2037_v60 = vmul.f32 %v1709_v56, %v1707_v52 }
 0x1ea   : > { %v1713_v61 = vpop.eup %1712 }
 0x1eb   : > { %v1715_v62 = vpop.eup %1714  ;;  %1728 = vpow2.f32 %v1480_v59  ;;  %v2039_v63 = vmul.f32 %v1713_v61, %v1711_v58 }
 0x1ec   : > { %v807_v0 = vadd.f32 1.0, %v1715_v62  ;;  %v724_v1 = vpop.f32.mrb[20].mxu1  ;;  %1730 = vtanh.f32 %v707_v27 }
 0x1ed   : > { %v1717_v2 = vpop.eup %1716  ;;  %v725_v3 = vadd.f32 %v724_v1, %v1994_v45  ;;  %v726_v4 = vpop.f32.mrb[21].mxu1  ;;  %887 = vrot.lane.b32.xlu1 %v1713_v61, %s1823_s15 }
 0x1ee   : > { %1732 = vrcp.f32 %v807_v0  ;;  %v808_v5 = vadd.f32 1.0, %v1717_v2  ;;  %v727_v6 = vadd.f32 %v726_v4, %v1996_v46  ;;  %v728_v7 = vpop.f32.mrb[22].mxu1  ;;  %v1719_v8 = vpop.eup %1718 }
 0x1ef   : > { %1734 = vtanh.f32 %v711_v34  ;;  %v1481_v9 = vmul.f32 -1.442695, %v725_v3  ;;  %v729_v10 = vadd.f32 %v728_v7, %v1994_v45  ;;  %v730_v11 = vpop.f32.mrb[23].mxu1 }
 0x1f0   : > { %v1721_v12 = vpop.eup %1720  ;;  %1736 = vrcp.f32 %v808_v5  ;;  %v731_v13 = vadd.f32 %v730_v11, %v1996_v46 }
 0x1f1   : > { %v1723_v14 = vpop.eup %1722  ;;  %1738 = vpow2.f32 %v1481_v9  ;;  %v1482_v15 = vmul.f32 -1.442695, %v729_v10  ;;  %889 = vrot.lane.b32.xlu0 %v1721_v12, %s1823_s15  ;;  %v2047_v16 = vmul.f32 %v1721_v12, %v1719_v8 }
 0x1f2   : > { %v1725_v17 = vpop.eup %1724 }
 0x1f3   : > { %v1727_v18 = vpop.eup %1726  ;;  %1740 = vpow2.f32 %v1482_v15  ;;  %891 = vrot.lane.b32.xlu1 %v1725_v17, %s1823_s15  ;;  %v2050_v19 = vmul.f32 %v1725_v17, %v1723_v14 }
 0x1f4   : > { %v809_v20 = vadd.f32 1.0, %v1727_v18  ;;  %v734_v21 = vpop.f32.mrb[24].mxu1  ;;  %1742 = vtanh.f32 %v717_v50 }
 0x1f5   : > { %v1729_v22 = vpop.eup %1728  ;;  %v735_v23 = vadd.f32 %v734_v21, %v1994_v45  ;;  %v736_v24 = vpop.f32.mrb[25].mxu1 }
 0x1f6   : > { %1744 = vrcp.f32 %v809_v20  ;;  %v810_v25 = vadd.f32 1.0, %v1729_v22  ;;  %v737_v26 = vadd.f32 %v736_v24, %v1996_v46  ;;  %v738_v27 = vpop.f32.mrb[26].mxu1  ;;  %v1731_v28 = vpop.eup %1730  ;;  %v1678_v20 = vld [vmem:[%s2218_s7] sm:$0xff]  }
 0x1f7   : > { %1746 = vtanh.f32 %v721_v57  ;;  %v1483_v29 = vmul.f32 -1.442695, %v735_v23  ;;  %v739_v30 = vadd.f32 %v738_v27, %v1994_v45  ;;  %v740_v31 = vpop.f32.mrb[27].mxu1  ;;  %1601 = vmatprep.subr.bf16.mxu0 %v1678_v20 }
 0x1f8   : > { %v1733_v32 = vpop.eup %1732  ;;  %1748 = vrcp.f32 %v810_v25  ;;  %v741_v33 = vadd.f32 %v740_v31, %v1996_v46 }
 0x1f9   : > { %v1735_v34 = vpop.eup %1734  ;;  %1750 = vpow2.f32 %v1483_v29  ;;  %v1484_v35 = vmul.f32 -1.442695, %v739_v30  ;;  %893 = vrot.lane.b32.xlu0 %v1733_v32, %s1823_s15  ;;  %v2057_v36 = vmul.f32 %v1733_v32, %v1731_v28 }
 0x1fa   : > { %v1737_v37 = vpop.eup %1736 }
 0x1fb   : > { %v1739_v39 = vpop.eup %1738  ;;  %1752 = vpow2.f32 %v1484_v35  ;;  %895 = vrot.lane.b32.xlu1 %v1737_v37, %s1823_s15  ;;  %v2060_v40 = vmul.f32 %v1737_v37, %v1735_v34 }
 0x1fc   : > { %v811_v42 = vadd.f32 1.0, %v1739_v39  ;;  %v744_v43 = vpop.f32.mrb[28].mxu1  ;;  %1754 = vtanh.f32 %v727_v6 }
 0x1fd   : > { %v1741_v44 = vpop.eup %1740  ;;  %v745_v47 = vadd.f32 %v744_v43, %v1994_v45  ;;  %v746_v48 = vpop.f32.mrb[29].mxu1 }
 0x1fe   : > { %1756 = vrcp.f32 %v811_v42  ;;  %v812_v49 = vadd.f32 1.0, %v1741_v44  ;;  %v747_v50 = vadd.f32 %v746_v48, %v1996_v46  ;;  %v748_v51 = vpop.f32.mrb[30].mxu1  ;;  %v1743_v52 = vpop.eup %1742 }
 0x1ff   : > { %1758 = vtanh.f32 %v731_v13  ;;  %v1485_v53 = vmul.f32 -1.442695, %v745_v47  ;;  %v749_v54 = vadd.f32 %v748_v51, %v1994_v45  ;;  %v750_v55 = vpop.f32.mrb[31].mxu1 }
 0x200   : > { %v1745_v56 = vpop.eup %1744  ;;  %1760 = vrcp.f32 %v812_v49  ;;  %v751_v57 = vadd.f32 %v750_v55, %v1996_v46 }
 0x201   : > { %v1747_v58 = vpop.eup %1746  ;;  %1762 = vpow2.f32 %v1485_v53  ;;  %v1486_v59 = vmul.f32 -1.442695, %v749_v54  ;;  %897 = vrot.lane.b32.xlu0 %v1745_v56, %s1823_s15  ;;  %v2067_v61 = vmul.f32 %v1745_v56, %v1743_v52  ;;  %v1682_v56 = vld [vmem:[%s2218_s7 + $0x20] sm:$0xff]  }
 0x202   : > { %v1749_v62 = vpop.eup %1748 }
 0x203   : > { %v1751_v0 = vpop.eup %1750  ;;  %1764 = vpow2.f32 %v1486_v59  ;;  %899 = vrot.lane.b32.xlu1 %v1749_v62, %s1823_s15  ;;  %v2070_v1 = vmul.f32 %v1749_v62, %v1747_v58  ;;  %v1683_v58 = vld [vmem:[%s2218_s7 + $0x28] sm:$0xff]  }
 0x204   : > { %v813_v45 = vadd.f32 1.0, %v1751_v0  ;;  %1766 = vtanh.f32 %v737_v26 }
 0x205   : > { %v1753_v2 = vpop.eup %1752 }
 0x206   : > { %1768 = vrcp.f32 %v813_v45  ;;  %v814_v3 = vadd.f32 1.0, %v1753_v2  ;;  %v1755_v46 = vpop.eup %1754 }
 0x207   : > { %1770 = vtanh.f32 %v741_v33 }
 0x208   : > { %v1757_v4 = vpop.eup %1756  ;;  %1772 = vrcp.f32 %v814_v3 }
 0x209   : > { %v1759_v5 = vpop.eup %1758  ;;  %901 = vrot.lane.b32.xlu0 %v1757_v4, %s1823_s15  ;;  %v2073_v6 = vmul.f32 %v1757_v4, %v1755_v46  ;;  %1774 = vtanh.f32 %v747_v50 }
 0x20a   : > { %v1761_v7 = vpop.eup %1760 }
 0x20b   : > { %v1763_v8 = vpop.eup %1762  ;;  %903 = vrot.lane.b32.xlu1 %v1761_v7, %s1823_s15  ;;  %v2076_v9 = vmul.f32 %v1761_v7, %v1759_v5 }
 0x20c   : > { %v815_v10 = vadd.f32 1.0, %v1763_v8 }
 0x20d   : > { %v1765_v11 = vpop.eup %1764 }
 0x20e   : > { %1776 = vrcp.f32 %v815_v10  ;;  %v816_v12 = vadd.f32 1.0, %v1765_v11  ;;  %v1767_v13 = vpop.eup %1766 }
 0x20f   : > { %1778 = vtanh.f32 %v751_v57 }
 0x210   : > { %v1769_v14 = vpop.eup %1768  ;;  %1780 = vrcp.f32 %v816_v12 }
 0x211   : > { %v1771_v15 = vpop.eup %1770  ;;  %905 = vrot.lane.b32.xlu0 %v1769_v14, %s1823_s15  ;;  %v2079_v17 = vmul.f32 %v1769_v14, %v1767_v13  ;;  %1782 = vtanh.f32 %v2027_v38 }
 0x212   : > { %v1773_v18 = vpop.eup %1772  ;;  %1784 = vtanh.f32 %v2029_v41 }
 0x213   : > { %907 = vrot.lane.b32.xlu1 %v1773_v18, %s1823_s15  ;;  %v2085_v21 = vmul.f32 %v1773_v18, %v1771_v15  ;;  %v1775_v22 = vpop.eup %1774  ;;  %1786 = vtanh.f32 %v2037_v60 }
 0x214   : > { %1788 = vtanh.f32 %v2039_v63 }
 0x215   : > { %1790 = vtanh.f32 %v2047_v16  ;;  %v1679_v16 = vld [vmem:[%s2218_s7 + $0x8] sm:$0xff]  }
 0x216   : > { %1792 = vtanh.f32 %v2050_v19 }
 0x217   : > { %1794 = vtanh.f32 %v2057_v36  ;;  %v1680_v36 = vld [vmem:[%s2218_s7 + $0x10] sm:$0xff]  }
 0x218   : > { %v1777_v23 = vpop.eup %1776  ;;  %1796 = vtanh.f32 %v2060_v40  ;;  %v1681_v40 = vld [vmem:[%s2218_s7 + $0x18] sm:$0xff]  }
 0x219   : > { %v1779_v24 = vpop.eup %1778  ;;  %909 = vrot.lane.b32.xlu0 %v1777_v23, %s1823_s15  ;;  %v2088_v25 = vmul.f32 %v1777_v23, %v1775_v22  ;;  %1798 = vtanh.f32 %v2067_v61 }
 0x21a   : > { %v1781_v26 = vpop.eup %1780  ;;  %1800 = vtanh.f32 %v2070_v1 }
 0x21b   : > { %911 = vrot.lane.b32.xlu1 %v1781_v26, %s1823_s15  ;;  %v2091_v27 = vmul.f32 %v1781_v26, %v1779_v24  ;;  %v1783_v28 = vpop.eup %1782  ;;  %1802 = vtanh.f32 %v2073_v6  ;;  %v1685_v26 = vld [vmem:[%s2218_s7 + $0x38] sm:$0xff]  }
 0x21c   : > { %v1785_v38 = vpop.eup %1784  ;;  %1804 = vtanh.f32 %v2076_v9 }
 0x21d   : > { %v1787_v32 = vpop.eup %1786  ;;  %1806 = vtanh.f32 %v2079_v17 }
 0x21e   : > { %v1789_v35 = vpop.eup %1788  ;;  %1808 = vtanh.f32 %v2085_v21 }
 0x21f   : > { %v1791_v42 = vpop.eup %1790  ;;  %1810 = vtanh.f32 %v2088_v25  ;;  %v1684_v25 = vld [vmem:[%s2218_s7 + $0x30] sm:$0xff]  }
 0x220   : > { %v1793_v44 = vpop.eup %1792  ;;  %1812 = vtanh.f32 %v2091_v27  ;;  %v2155_v27 = vld [vmem:[%s2217_s6] ss:$0 sm:$0xff] }
 0x221   : > { %v1795_v50 = vpop.eup %1794 }
 0x222   : > { %v1797_v53 = vpop.eup %1796 }
 0x223   : > { %v1799_v59 = vpop.eup %1798 }
 0x224   : > { %v1801_v0 = vpop.eup %1800 }
 0x225   : > { %v1803_v3 = vpop.eup %1802 }
 0x226   : > { %v1805_v5 = vpop.eup %1804 }
 0x227   : > { %v1807_v9 = vpop.eup %1806 }
 0x228   : > { %v1809_v12 = vpop.eup %1808 }
 0x229   : > { %v1811_v17 = vpop.eup %1810 }
 0x22a   : > { %v1813_v21 = vpop.eup %1812 }
 0x253   : > { %v882_v29 = vpop.permute.xlu0 %881 }
 0x254   : > { %v929_v30 = vmul.f32 %v1783_v28, %v882_v29 }
 0x256   : > { %1329 = vst [vmem:[%s2100_s21] sm:$0xff] %v929_v30 }
 0x257   : > { %v884_v31 = vpop.permute.xlu0 %883 }
 0x258   : > { %v930_v41 = vmul.f32 %v1785_v38, %v884_v31 }
 0x25a   : > { %v945_v60 = vpack.c.bf16 %v930_v41, %v929_v30  ;;  %1330 = vst [vmem:[%s2100_s21 + $0x18] sm:$0xff] %v930_v41 }
 0x25b   : > { %v886_v33 = vpop.permute.xlu1 %885 }
 0x25c   : > { %v931_v34 = vmul.f32 %v1787_v32, %v886_v33  ;;  %1585 = vmatprep.mubr.bf16.mxu0 %v945_v60 }
 0x25e   : > { %1331 = vst [vmem:[%s2100_s21 + $0x30] sm:$0xff] %v931_v34 }
 0x25f   : > { %v888_v37 = vpop.permute.xlu1 %887 }
 0x260   : > { %v932_v63 = vmul.f32 %v1789_v35, %v888_v37 }
 0x262   : > { %v946_v39 = vpack.c.bf16 %v932_v63, %v931_v34  ;;  %1332 = vst [vmem:[%s2100_s21 + $0x48] sm:$0xff] %v932_v63 }
 0x263   : > { %v890_v43 = vpop.permute.xlu0 %889 }
 0x264   : > { %v933_v19 = vmul.f32 %v1791_v42, %v890_v43  ;;  %1586 = vmatmul.mubr.bf16.vlgmr.msra.gmra.mrb[16].mxu0 %v946_v39 }
 0x265   : > { %v892_v47 = vpop.permute.xlu1 %891  ;;  %1602 = vmatpush3.bf16.msra.mxu0 %v1678_v20 }
 0x266   : > { %1333 = vst [vmem:[%s2100_s21 + $0x60] sm:$0xff] %v933_v19  ;;  %v934_v48 = vmul.f32 %v1793_v44, %v892_v47  ;;  %1603 = vmatprep.subr.bf16.mxu0 %v1679_v16 }
 0x268   : > { %v947_v49 = vpack.c.bf16 %v934_v48, %v933_v19  ;;  %1334 = vst [vmem:[%s2100_s21 + $0x78] sm:$0xff] %v934_v48 }
 0x269   : > { %1604 = vmatpush3.bf16.msra.mxu0 %v1679_v16 }
 0x26a   : > { %1589 = vmatprep.mubr.bf16.mxu0 %v947_v49  ;;  %1605 = vmatprep.subr.bf16.mxu0 %v1680_v36 }
 0x26b   : > { %v894_v51 = vpop.permute.xlu0 %893 }
 0x26c   : > { %v935_v52 = vmul.f32 %v1795_v50, %v894_v51 }
 0x26d   : > { %v896_v54 = vpop.permute.xlu1 %895  ;;  %1606 = vmatpush3.bf16.msra.mxu0 %v1680_v36 }
 0x26e   : > { %1335 = vst [vmem:[%s2100_s21 + $0x90] sm:$0xff] %v935_v52  ;;  %v936_v55 = vmul.f32 %v1797_v53, %v896_v54  ;;  %1607 = vmatprep.subr.bf16.mxu0 %v1681_v40 }
 0x270   : > { %v948_v57 = vpack.c.bf16 %v936_v55, %v935_v52  ;;  %1336 = vst [vmem:[%s2100_s21 + $0xa8] sm:$0xff] %v936_v55 }
 0x271   : > { %1608 = vmatpush3.bf16.msra.mxu0 %v1681_v40 }
 0x272   : > { %1590 = vmatmul.mubr.bf16.gmra.mrb[20].mxu0 %v948_v57  ;;  %1609 = vmatprep.subr.bf16.mxu0 %v1682_v56 }
 0x273   : > { %v898_v61 = vpop.permute.xlu0 %897 }
 0x274   : > { %v937_v62 = vmul.f32 %v1799_v59, %v898_v61 }
 0x275   : > { %v900_v1 = vpop.permute.xlu1 %899  ;;  %1610 = vmatpush3.bf16.msra.mxu0 %v1682_v56 }
 0x276   : > { %1337 = vst [vmem:[%s2100_s21 + $0xc0] sm:$0xff] %v937_v62  ;;  %v938_v45 = vmul.f32 %v1801_v0, %v900_v1  ;;  %1611 = vmatprep.subr.bf16.mxu0 %v1683_v58 }
 0x278   : > { %v949_v2 = vpack.c.bf16 %v938_v45, %v937_v62  ;;  %1338 = vst [vmem:[%s2100_s21 + $0xd8] sm:$0xff] %v938_v45 }
 0x279   : > { %1612 = vmatpush3.bf16.msra.mxu0 %v1683_v58 }
 0x27a   : > { %1593 = vmatprep.mubr.bf16.mxu0 %v949_v2  ;;  %1613 = vmatprep.subr.bf16.mxu0 %v1684_v25 }
 0x27b   : > { %v902_v46 = vpop.permute.xlu0 %901 }
 0x27c   : > { %v939_v4 = vmul.f32 %v1803_v3, %v902_v46 }
 0x27d   : > { %v904_v6 = vpop.permute.xlu1 %903  ;;  %1614 = vmatpush3.bf16.msra.mxu0 %v1684_v25 }
 0x27e   : > { %1339 = vst [vmem:[%s2100_s21 + $0xf0] sm:$0xff] %v939_v4  ;;  %v940_v7 = vmul.f32 %v1805_v5, %v904_v6  ;;  %1615 = vmatprep.subr.bf16.mxu0 %v1685_v26 }
 0x280   : > { %v950_v8 = vpack.c.bf16 %v940_v7, %v939_v4  ;;  %1340 = vst [vmem:[%s2100_s21 + $0x108] sm:$0xff] %v940_v7 }
 0x281   : > { %1616 = vmatpush3.bf16.msra.mxu0 %v1685_v26 }
 0x282   : > { %1594 = vmatmul.mubr.bf16.gmra.mrb[24].mxu0 %v950_v8 }
 0x283   : > { %v906_v10 = vpop.permute.xlu0 %905 }
 0x284   : > { %v941_v11 = vmul.f32 %v1807_v9, %v906_v10 }
 0x285   : > { %v908_v13 = vpop.permute.xlu1 %907 }
 0x286   : > { %1341 = vst [vmem:[%s2100_s21 + $0x120] sm:$0xff] %v941_v11  ;;  %v942_v14 = vmul.f32 %v1809_v12, %v908_v13 }
 0x288   : > { %v951_v15 = vpack.c.bf16 %v942_v14, %v941_v11  ;;  %1342 = vst [vmem:[%s2100_s21 + $0x138] sm:$0xff] %v942_v14 }
 0x28a   : > { %1597 = vmatprep.mubr.bf16.mxu0 %v951_v15 }
 0x28b   : > { %v910_v18 = vpop.permute.xlu0 %909 }
 0x28c   : > { %v943_v20 = vmul.f32 %v1811_v17, %v910_v18 }
 0x28d   : > { %v912_v22 = vpop.permute.xlu1 %911 }
 0x28e   : > { %1343 = vst [vmem:[%s2100_s21 + $0x150] sm:$0xff] %v943_v20  ;;  %v944_v23 = vmul.f32 %v1813_v21, %v912_v22 }
 0x290   : > { %v952_v24 = vpack.c.bf16 %v944_v23, %v943_v20  ;;  %1344 = vst [vmem:[%s2100_s21 + $0x168] sm:$0xff] %v944_v23  ;;  %v1496_v20 = vld [vmem:[%s2219_s8] ss:$0 sm:$0xff] }
 0x292   : > { %1598 = vmatmul.mubr.bf16.gmra.mrb[28].mxu0 %v952_v24 }
 0x337   : > { %v1587_v28 = vpop.f32.mrb[16].mxu0 }
 0x338   : > { %v1067_v29 = vadd.f32 %v1587_v28, %v2155_v27  ;;  %v1058_v30 = vpop.f32.mrb[17].mxu0 }
 0x339   : > { %v1059_v38 = vadd.f32 %v2155_v27, %v1058_v30  ;;  %v1588_v31 = vpop.f32.mrb[18].mxu0 }
 0x33a   : > { %v1123_v41 = vmax.f32 %v1067_v29, 0.0  ;;  %v1070_v60 = vadd.f32 %v1588_v31, %v2155_v27  ;;  %v1061_v32 = vpop.f32.mrb[19].mxu0 }
 0x33b   : > { %v1121_v33 = vmax.f32 %v1059_v38, 0.0  ;;  %v1062_v34 = vadd.f32 %v2155_v27, %v1061_v32 }
 0x33c   : > { %1347 = vst [vmem:[%s2100_s21 + $0x38] sm:$0xff] %v1123_v41  ;;  %v1124_v35 = vmax.f32 %v1070_v60, 0.0 }
 0x33d   : > { %1345 = vst [vmem:[%s2100_s21 + $0x8] sm:$0xff] %v1121_v33  ;;  %v1122_v37 = vmax.f32 %v1062_v34, 0.0 }
 0x33e   : > { %v1138_v63 = vpack.c.bf16 %v1124_v35, %v1123_v41  ;;  %1348 = vst [vmem:[%s2100_s21 + $0x50] sm:$0xff] %v1124_v35 }
 0x33f   : > { %v1137_v39 = vpack.c.bf16 %v1122_v37, %v1121_v33  ;;  %1346 = vst [vmem:[%s2100_s21 + $0x20] sm:$0xff] %v1122_v37 }
 0x341   : > { %1617 = vmatprep.mubr.bf16.mxu0 %v1137_v39 }
 0x342   : > { %1618 = vmatmul.mubr.bf16.vlgmr.msra.gmra.mrb[32].mxu0 %v1138_v63 }
 0x345   : > { %v1591_v16 = vpop.f32.mrb[20].mxu0 }
 0x346   : > { %v1083_v42 = vadd.f32 %v1591_v16, %v2155_v27  ;;  %v1074_v43 = vpop.f32.mrb[21].mxu0 }
 0x347   : > { %v1075_v19 = vadd.f32 %v2155_v27, %v1074_v43  ;;  %v1592_v44 = vpop.f32.mrb[22].mxu0 }
 0x348   : > { %v1127_v47 = vmax.f32 %v1083_v42, 0.0  ;;  %v1086_v48 = vadd.f32 %v1592_v44, %v2155_v27  ;;  %v1077_v36 = vpop.f32.mrb[23].mxu0 }
 0x349   : > { %v1125_v49 = vmax.f32 %v1075_v19, 0.0  ;;  %v1078_v40 = vadd.f32 %v2155_v27, %v1077_v36 }
 0x34a   : > { %1351 = vst [vmem:[%s2100_s21 + $0x98] sm:$0xff] %v1127_v47  ;;  %v1128_v50 = vmax.f32 %v1086_v48, 0.0 }
 0x34b   : > { %1349 = vst [vmem:[%s2100_s21 + $0x68] sm:$0xff] %v1125_v49  ;;  %v1126_v51 = vmax.f32 %v1078_v40, 0.0 }
 0x34c   : > { %v1140_v52 = vpack.c.bf16 %v1128_v50, %v1127_v47  ;;  %1352 = vst [vmem:[%s2100_s21 + $0xb0] sm:$0xff] %v1128_v50 }
 0x34d   : > { %v1139_v53 = vpack.c.bf16 %v1126_v51, %v1125_v49  ;;  %1350 = vst [vmem:[%s2100_s21 + $0x80] sm:$0xff] %v1126_v51 }
 0x34f   : > { %1621 = vmatprep.mubr.bf16.mxu0 %v1139_v53 }
 0x350   : > { %1622 = vmatmul.mubr.bf16.gmra.mrb[36].mxu0 %v1140_v52 }
 0x355   : > { %v1595_v54 = vpop.f32.mrb[24].mxu0 }
 0x356   : > { %v1099_v55 = vadd.f32 %v1595_v54, %v2155_v27  ;;  %v1090_v56 = vpop.f32.mrb[25].mxu0 }
 0x357   : > { %v1091_v57 = vadd.f32 %v2155_v27, %v1090_v56  ;;  %v1596_v58 = vpop.f32.mrb[26].mxu0 }
 0x358   : > { %v1131_v59 = vmax.f32 %v1099_v55, 0.0  ;;  %v1102_v61 = vadd.f32 %v1596_v58, %v2155_v27  ;;  %v1093_v62 = vpop.f32.mrb[27].mxu0 }
 0x359   : > { %v1129_v0 = vmax.f32 %v1091_v57, 0.0  ;;  %v1094_v1 = vadd.f32 %v2155_v27, %v1093_v62 }
 0x35a   : > { %1355 = vst [vmem:[%s2100_s21 + $0xf8] sm:$0xff] %v1131_v59  ;;  %v1132_v45 = vmax.f32 %v1102_v61, 0.0 }
 0x35b   : > { %1353 = vst [vmem:[%s2100_s21 + $0xc8] sm:$0xff] %v1129_v0  ;;  %v1130_v2 = vmax.f32 %v1094_v1, 0.0 }
 0x35c   : > { %v1142_v3 = vpack.c.bf16 %v1132_v45, %v1131_v59  ;;  %1356 = vst [vmem:[%s2100_s21 + $0x110] sm:$0xff] %v1132_v45 }
 0x35d   : > { %v1141_v46 = vpack.c.bf16 %v1130_v2, %v1129_v0  ;;  %1354 = vst [vmem:[%s2100_s21 + $0xe0] sm:$0xff] %v1130_v2 }
 0x35f   : > { %1625 = vmatprep.mubr.bf16.mxu0 %v1141_v46 }
 0x360   : > { %1626 = vmatmul.mubr.bf16.gmra.mrb[40].mxu0 %v1142_v3 }
 0x365   : > { %v1599_v4 = vpop.f32.mrb[28].mxu0 }
 0x366   : > { %v1115_v5 = vadd.f32 %v1599_v4, %v2155_v27  ;;  %v1106_v6 = vpop.f32.mrb[29].mxu0 }
 0x367   : > { %v1107_v7 = vadd.f32 %v2155_v27, %v1106_v6  ;;  %v1600_v8 = vpop.f32.mrb[30].mxu0 }
 0x368   : > { %v1135_v9 = vmax.f32 %v1115_v5, 0.0  ;;  %v1118_v10 = vadd.f32 %v1600_v8, %v2155_v27  ;;  %v1109_v11 = vpop.f32.mrb[31].mxu0 }
 0x369   : > { %v1133_v12 = vmax.f32 %v1107_v7, 0.0  ;;  %v1110_v13 = vadd.f32 %v2155_v27, %v1109_v11 }
 0x36a   : > { %1359 = vst [vmem:[%s2100_s21 + $0x158] sm:$0xff] %v1135_v9  ;;  %v1136_v14 = vmax.f32 %v1118_v10, 0.0 }
 0x36b   : > { %1357 = vst [vmem:[%s2100_s21 + $0x128] sm:$0xff] %v1133_v12  ;;  %v1134_v15 = vmax.f32 %v1110_v13, 0.0 }
 0x36c   : > { %v1144_v17 = vpack.c.bf16 %v1136_v14, %v1135_v9  ;;  %1360 = vst [vmem:[%s2100_s21 + $0x170] sm:$0xff] %v1136_v14 }
 0x36d   : > { %v1143_v18 = vpack.c.bf16 %v1134_v15, %v1133_v12  ;;  %1358 = vst [vmem:[%s2100_s21 + $0x140] sm:$0xff] %v1134_v15 }
 0x36f   : > { %1629 = vmatprep.mubr.bf16.mxu0 %v1143_v18 }
 0x370   : > { %1630 = vmatmul.mubr.bf16.gmra.mrb[44].mxu0 %v1144_v17 }
 0x415   : > { %v1619_v21 = vpop.f32.mrb[32].mxu0 }
 0x416   : > { %v1259_v22 = vadd.f32 %v1619_v21, %v1496_v20  ;;  %v1250_v23 = vpop.f32.mrb[33].mxu0 }
 0x417   : > { %v1251_v24 = vadd.f32 %v1496_v20, %v1250_v23  ;;  %v1620_v25 = vpop.f32.mrb[34].mxu0 }
 0x418   : > { %v1315_v26 = vmax.f32 %v1259_v22, 0.0  ;;  %v1262_v27 = vadd.f32 %v1620_v25, %v1496_v20  ;;  %v1253_v28 = vpop.f32.mrb[35].mxu0 }
 0x419   : > { %v1313_v29 = vmax.f32 %v1251_v24, 0.0  ;;  %v1254_v30 = vadd.f32 %v1496_v20, %v1253_v28 }
 0x41a   : > { %1363 = vst [vmem:[%s2100_s21 + $0x40] sm:$0xff] %v1315_v26  ;;  %v1316_v38 = vmax.f32 %v1262_v27, 0.0 }
 0x41b   : > { %1361 = vst [vmem:[%s2100_s21 + $0x10] sm:$0xff] %v1313_v29  ;;  %v1314_v31 = vmax.f32 %v1254_v30, 0.0 }
 0x41c   : > { %1364 = vst [vmem:[%s2100_s21 + $0x58] sm:$0xff] %v1316_v38 }
 0x41d   : > { %1362 = vst [vmem:[%s2100_s21 + $0x28] sm:$0xff] %v1314_v31 }
 0x423   : > { %v1623_v41 = vpop.f32.mrb[36].mxu0 }
 0x424   : > { %v1275_v60 = vadd.f32 %v1623_v41, %v1496_v20  ;;  %v1266_v32 = vpop.f32.mrb[37].mxu0 }
 0x425   : > { %v1267_v33 = vadd.f32 %v1496_v20, %v1266_v32  ;;  %v1624_v34 = vpop.f32.mrb[38].mxu0 }
 0x426   : > { %v1319_v35 = vmax.f32 %v1275_v60, 0.0  ;;  %v1278_v37 = vadd.f32 %v1624_v34, %v1496_v20  ;;  %v1269_v63 = vpop.f32.mrb[39].mxu0 }
 0x427   : > { %v1317_v39 = vmax.f32 %v1267_v33, 0.0  ;;  %v1270_v16 = vadd.f32 %v1496_v20, %v1269_v63 }
 0x428   : > { %1367 = vst [vmem:[%s2100_s21 + $0xa0] sm:$0xff] %v1319_v35  ;;  %v1320_v42 = vmax.f32 %v1278_v37, 0.0 }
 0x429   : > { %1365 = vst [vmem:[%s2100_s21 + $0x70] sm:$0xff] %v1317_v39  ;;  %v1318_v43 = vmax.f32 %v1270_v16, 0.0 }
 0x42a   : > { %1368 = vst [vmem:[%s2100_s21 + $0xb8] sm:$0xff] %v1320_v42 }
 0x42b   : > { %1366 = vst [vmem:[%s2100_s21 + $0x88] sm:$0xff] %v1318_v43 }
 0x433   : > { %v1627_v19 = vpop.f32.mrb[40].mxu0 }
 0x434   : > { %v1291_v44 = vadd.f32 %v1627_v19, %v1496_v20  ;;  %v1282_v47 = vpop.f32.mrb[41].mxu0 }
 0x435   : > { %v1283_v48 = vadd.f32 %v1496_v20, %v1282_v47  ;;  %v1628_v36 = vpop.f32.mrb[42].mxu0 }
 0x436   : > { %v1323_v49 = vmax.f32 %v1291_v44, 0.0  ;;  %v1294_v40 = vadd.f32 %v1628_v36, %v1496_v20  ;;  %v1285_v50 = vpop.f32.mrb[43].mxu0 }
 0x437   : > { %v1321_v51 = vmax.f32 %v1283_v48, 0.0  ;;  %v1286_v52 = vadd.f32 %v1496_v20, %v1285_v50 }
 0x438   : > { %1371 = vst [vmem:[%s2100_s21 + $0x100] sm:$0xff] %v1323_v49  ;;  %v1324_v53 = vmax.f32 %v1294_v40, 0.0 }
 0x439   : > { %1369 = vst [vmem:[%s2100_s21 + $0xd0] sm:$0xff] %v1321_v51  ;;  %v1322_v54 = vmax.f32 %v1286_v52, 0.0 }
 0x43a   : > { %1372 = vst [vmem:[%s2100_s21 + $0x118] sm:$0xff] %v1324_v53 }
 0x43b   : > { %1370 = vst [vmem:[%s2100_s21 + $0xe8] sm:$0xff] %v1322_v54 }
 0x443   : > { %v1631_v55 = vpop.f32.mrb[44].mxu0 }
 0x444   : > { %v1307_v56 = vadd.f32 %v1631_v55, %v1496_v20  ;;  %v1298_v57 = vpop.f32.mrb[45].mxu0 }
 0x445   : > { %v1299_v58 = vadd.f32 %v1496_v20, %v1298_v57  ;;  %v1632_v59 = vpop.f32.mrb[46].mxu0 }
 0x446   : > { %v1327_v61 = vmax.f32 %v1307_v56, 0.0  ;;  %v1310_v62 = vadd.f32 %v1632_v59, %v1496_v20  ;;  %v1301_v0 = vpop.f32.mrb[47].mxu0 }
 0x447   : > { %v1325_v1 = vmax.f32 %v1299_v58, 0.0  ;;  %v1302_v45 = vadd.f32 %v1496_v20, %v1301_v0 }
 0x448   : > { %1375 = vst [vmem:[%s2100_s21 + $0x160] sm:$0xff] %v1327_v61  ;;  %v1328_v2 = vmax.f32 %v1310_v62, 0.0 }
 0x449   : > { %1373 = vst [vmem:[%s2100_s21 + $0x130] sm:$0xff] %v1325_v1  ;;  %v1326_v3 = vmax.f32 %v1302_v45, 0.0 }
 0x44a   : > { %1376 = vst [vmem:[%s2100_s21 + $0x178] sm:$0xff] %v1328_v2 }
 0x44b   : > { %1374 = vst [vmem:[%s2100_s21 + $0x148] sm:$0xff] %v1326_v3 }
 0x44c PF: > { %s19_s30 = sadd.s32 1, %s1820_s30  }
 0x44d   : > { %p16_p4 = scmp.ge.s32.totalorder %s19_s30, 4  }
 0x44f   :  { %18 = sbr.rel (!%p16_p4) target bundleno = 1 (0x1), region = 86 }

</bundles_post_ra>
